<compile_context>
chip_gen: v7x
topology: tpu7x:2x2x1
jax: 0.10.0
libtpu: 0.0.40
codegen_flags: <defaults>
</compile_context>

<pallas_src>
import functools

import jax
import jax.numpy as jnp
from jax.experimental import pallas as pl
from jax.experimental.pallas import tpu as pltpu

LAMDA = 0.1
EPS = 1e-8


def actor_loss_kernel(y_pred_ref, sel_ref, critic_ref, base_ref, gt_ref,
                      partial_ref, *, true_batch, tile_b, binary_selection):
    i = pl.program_id(0)

    y_pred = y_pred_ref[...].astype(jnp.float32)    # [TB, D]
    sel = sel_ref[...].astype(jnp.float32)          # [TB, D]
    critic = critic_ref[...].astype(jnp.float32)    # [TB, C]
    base = base_ref[...].astype(jnp.float32)        # [TB, C]
    gt = gt_ref[...].astype(jnp.float32)            # [TB, C]

    # Reward = -(CE(critic) - CE(baseline))
    #        = sum(gt * (log(critic+eps) - log(base+eps)))            -> [TB, 1]
    reward = jnp.sum(gt * (jnp.log(critic + EPS) - jnp.log(base + EPS)),
                     axis=1, keepdims=True)

    # Bernoulli log-likelihood of the sampled selection.
    if binary_selection:
        # Exact for a {0,1} mask (what INVASE samples); one log per element
        # on the dominant [B, D] path instead of two.
        chosen = jnp.where(sel >= 0.5, y_pred, 1.0 - y_pred)
        log_lik = jnp.sum(jnp.log(chosen + EPS), axis=1, keepdims=True)
    else:
        # Exact PyTorch formula for arbitrary (fractional) selection values.
        log_lik = jnp.sum(sel * jnp.log(y_pred + EPS)
                          + (1.0 - sel) * jnp.log(1.0 - y_pred + EPS),
                          axis=1, keepdims=True)

    # Sparsity regularizer.
    mean_sel_prob = jnp.mean(y_pred, axis=1, keepdims=True)            # [TB, 1]

    custom = reward * log_lik - LAMDA * mean_sel_prob                  # [TB, 1]

    # Mask rows of the tail tile that overhang the true batch.  This branch is
    # resolved at trace time, so the iota/where vanish when B % tile_b == 0.
    if true_batch % tile_b != 0:
        row_ids = i * tile_b + jax.lax.broadcasted_iota(jnp.int32, custom.shape, 0)
        custom = jnp.where(row_ids < true_batch, custom, 0.0)

    # Negated per-tile partial sum; the divide-by-B mean happens outside the
    # kernel so the batch grid axis can stay "parallel".
    partial_ref[...] = (-jnp.sum(custom)).reshape(1, 1)


def actor_loss(y_pred, selection, critic_out, baseline_out, ground_truth,
               *, tile_b=None, binary_selection=True):
    """INVASE actor loss; returns a scalar float32.

    binary_selection=True uses the fast single-log form (exact when
    `selection` is a {0,1} mask).  Set False for the exact two-log formula.
    """
    B, D = y_pred.shape
    _, C = critic_out.shape

    def isz(x):
        return jnp.dtype(x.dtype).itemsize

    bytes_per_row = (isz(y_pred) + isz(selection)) * D + \
                    (isz(critic_out) + isz(baseline_out) + isz(ground_truth)) * C

    # --- tile sizing ---------------------------------------------------------
    # Keep double-buffered input tiles within ~16 MiB (safe on v7x's 64 MiB
    # VMEM and well under the 32 MiB scoped default), rows a multiple of 8
    # (f32 sublane), capped at 2048 rows so grids stay short for small D.
    if tile_b is None:
        budget = 16 * 1024 * 1024
        tile_b = budget // (2 * max(bytes_per_row, 1))
        tile_b = max(8, min(2048, (tile_b // 8) * 8))
    tile_b = int(min((max(int(tile_b), 8) // 8) * 8, ((B + 7) // 8) * 8))
    tile_b = max(8, tile_b)

    num_tiles = pl.cdiv(B, tile_b)

    kernel = functools.partial(actor_loss_kernel, true_batch=B, tile_b=tile_b,
                               binary_selection=binary_selection)

    logs_per_bd = 1 if binary_selection else 2
    cost = pl.CostEstimate(
        flops=B * (6 * D + 8 * C),
        transcendentals=B * (logs_per_bd * D + 2 * C),
        bytes_accessed=B * bytes_per_row + num_tiles * 4,
    )

    partials = pl.pallas_call(
        kernel,
        out_shape=jax.ShapeDtypeStruct((num_tiles, 1), jnp.float32),
        grid_spec=pltpu.PrefetchScalarGridSpec(
            num_scalar_prefetch=0,
            grid=(num_tiles,),
            in_specs=[
                pl.BlockSpec((tile_b, D), lambda i: (i, 0)),  # y_pred
                pl.BlockSpec((tile_b, D), lambda i: (i, 0)),  # selection
                pl.BlockSpec((tile_b, C), lambda i: (i, 0)),  # critic_out
                pl.BlockSpec((tile_b, C), lambda i: (i, 0)),  # baseline_out
                pl.BlockSpec((tile_b, C), lambda i: (i, 0)),  # ground_truth
            ],
            out_specs=pl.BlockSpec((1, 1), lambda i: (i, 0)),
        ),
        compiler_params=pltpu.CompilerParams(
            dimension_semantics=("parallel",),
            vmem_limit_bytes=32 * 1024 * 1024,
        ),
        cost_estimate=cost,
    )(y_pred, selection, critic_out, baseline_out, ground_truth)

    # Final reduction over tiles + mean over the *true* batch.
    return jnp.sum(partials) / B


def actor_loss_ref(y_pred, selection, critic_out, baseline_out, ground_truth):
    """Pure-JAX reference mirroring the PyTorch forward exactly."""
    critic_loss = -jnp.sum(ground_truth * jnp.log(critic_out + EPS), axis=1)
    baseline_loss = -jnp.sum(ground_truth * jnp.log(baseline_out + EPS), axis=1)
    reward = -(critic_loss - baseline_loss)
    custom = reward * jnp.sum(
        selection * jnp.log(y_pred + EPS)
        + (1 - selection) * jnp.log(1 - y_pred + EPS), axis=1
    ) - LAMDA * jnp.mean(y_pred, axis=1)
    return jnp.mean(-custom)


if __name__ == "__main__":
    key = jax.random.PRNGKey(0)

    # ---- test 1: binary selection, batch divides the tile --------------------
    B, D, C = 8, 32, 8
    k1, k2, k3, k4, k5 = jax.random.split(key, 5)
    y_pred = jax.nn.sigmoid(jax.random.normal(k1, (B, D), dtype=jnp.float32))
    selection = (jax.random.uniform(k2, (B, D)) < 0.5).astype(jnp.float32)
    critic_out = jax.nn.softmax(jax.random.normal(k3, (B, C), dtype=jnp.float32), axis=1)
    baseline_out = jax.nn.softmax(jax.random.normal(k4, (B, C), dtype=jnp.float32), axis=1)
    labels = jax.random.randint(k5, (B,), 0, C)
    ground_truth = jax.nn.one_hot(labels, C, dtype=jnp.float32)

    loss = actor_loss(y_pred, selection, critic_out, baseline_out, ground_truth)
    jax.block_until_ready(loss)
    ref = actor_loss_ref(y_pred, selection, critic_out, baseline_out, ground_truth)
    assert jnp.allclose(loss, ref, rtol=1e-5, atol=1e-5), (loss, ref)

    # ---- test 2: ragged batch (masked tail tile) + exact two-log path --------
    B2 = 12
    k6, k7, k8, k9, k10 = jax.random.split(jax.random.PRNGKey(1), 5)
    y_pred2 = jax.nn.sigmoid(jax.random.normal(k6, (B2, D), dtype=jnp.float32))
    selection2 = jax.random.uniform(k7, (B2, D), dtype=jnp.float32)  # fractional
    critic2 = jax.nn.softmax(jax.random.normal(k8, (B2, C), dtype=jnp.float32), axis=1)
    baseline2 = jax.nn.softmax(jax.random.normal(k9, (B2, C), dtype=jnp.float32), axis=1)
    gt2 = jax.nn.one_hot(jax.random.randint(k10, (B2,), 0, C), C, dtype=jnp.float32)

    loss2 = actor_loss(y_pred2, selection2, critic2, baseline2, gt2,
                       tile_b=8, binary_selection=False)
    jax.block_until_ready(loss2)
    ref2 = actor_loss_ref(y_pred2, selection2, critic2, baseline2, gt2)
    assert jnp.allclose(loss2, ref2, rtol=1e-5, atol=1e-5), (loss2, ref2)

    print("KERNEL_OK")
</pallas_src>

<mosaic_0001>
module attributes {stable_mosaic.version = 11 : i64} {
  func.func @actor_loss_kernel(%arg0: i32, %arg1: memref<8x32xf32, #tpu.memory_space<vmem>>, %arg2: memref<8x32xf32, #tpu.memory_space<vmem>>, %arg3: memref<8x8xf32, #tpu.memory_space<vmem>>, %arg4: memref<8x8xf32, #tpu.memory_space<vmem>>, %arg5: memref<8x8xf32, #tpu.memory_space<vmem>>, %arg6: memref<1x1xf32, #tpu.memory_space<vmem>>) attributes {dimension_semantics = [#tpu.dimension_semantics<parallel>], iteration_bounds = array<i64: 1>, scalar_prefetch = 0 : i64, scratch_operands = 0 : i64, tpu.core_type = #tpu.core_type<tc>, window_params = [{transform_indices = @transform_0, window_bounds = array<i64: 8, 32>}, {transform_indices = @transform_1, window_bounds = array<i64: 8, 32>}, {transform_indices = @transform_2, window_bounds = array<i64: 8, 8>}, {transform_indices = @transform_3, window_bounds = array<i64: 8, 8>}, {transform_indices = @transform_4, window_bounds = array<i64: 8, 8>}, {transform_indices = @transform_5, window_bounds = array<i64: 1, 1>}]} {
    %c0 = arith.constant 0 : index
    %c0_0 = arith.constant 0 : index
    %0 = vector.load %arg1[%c0, %c0_0] : memref<8x32xf32, #tpu.memory_space<vmem>>, vector<8x32xf32>
    %c0_1 = arith.constant 0 : index
    %c0_2 = arith.constant 0 : index
    %1 = vector.load %arg2[%c0_1, %c0_2] : memref<8x32xf32, #tpu.memory_space<vmem>>, vector<8x32xf32>
    %c0_3 = arith.constant 0 : index
    %c0_4 = arith.constant 0 : index
    %2 = vector.load %arg3[%c0_3, %c0_4] : memref<8x8xf32, #tpu.memory_space<vmem>>, vector<8x8xf32>
    %c0_5 = arith.constant 0 : index
    %c0_6 = arith.constant 0 : index
    %3 = vector.load %arg4[%c0_5, %c0_6] : memref<8x8xf32, #tpu.memory_space<vmem>>, vector<8x8xf32>
    %c0_7 = arith.constant 0 : index
    %c0_8 = arith.constant 0 : index
    %4 = vector.load %arg5[%c0_7, %c0_8] : memref<8x8xf32, #tpu.memory_space<vmem>>, vector<8x8xf32>
    %cst = arith.constant 9.99999993E-9 : f32
    %5 = vector.broadcast %cst : f32 to vector<8x8xf32>
    %6 = arith.addf %2, %5 : vector<8x8xf32>
    %7 = math.log %6 : vector<8x8xf32>
    %cst_9 = arith.constant 9.99999993E-9 : f32
    %8 = vector.broadcast %cst_9 : f32 to vector<8x8xf32>
    %9 = arith.addf %3, %8 : vector<8x8xf32>
    %10 = math.log %9 : vector<8x8xf32>
    %11 = arith.subf %7, %10 : vector<8x8xf32>
    %12 = arith.mulf %4, %11 : vector<8x8xf32>
    %cst_10 = arith.constant dense<0.000000e+00> : vector<8xf32>
    %13 = vector.multi_reduction <add>, %12, %cst_10 [1] : vector<8x8xf32> to vector<8xf32>
    %14 = vector.shape_cast %13 : vector<8xf32> to vector<8x1xf32>
    %cst_11 = arith.constant 5.000000e-01 : f32
    %15 = vector.broadcast %cst_11 : f32 to vector<8x32xf32>
    %16 = arith.cmpf oge, %1, %15 : vector<8x32xf32>
    %cst_12 = arith.constant 1.000000e+00 : f32
    %17 = vector.broadcast %cst_12 : f32 to vector<8x32xf32>
    %18 = arith.subf %17, %0 : vector<8x32xf32>
    %19 = arith.select %16, %0, %18 : vector<8x32xi1>, vector<8x32xf32>
    %cst_13 = arith.constant 9.99999993E-9 : f32
    %20 = vector.broadcast %cst_13 : f32 to vector<8x32xf32>
    %21 = arith.addf %19, %20 : vector<8x32xf32>
    %22 = math.log %21 : vector<8x32xf32>
    %cst_14 = arith.constant dense<0.000000e+00> : vector<8xf32>
    %23 = vector.multi_reduction <add>, %22, %cst_14 [1] : vector<8x32xf32> to vector<8xf32>
    %24 = vector.shape_cast %23 : vector<8xf32> to vector<8x1xf32>
    %cst_15 = arith.constant dense<0.000000e+00> : vector<8xf32>
    %25 = vector.multi_reduction <add>, %0, %cst_15 [1] : vector<8x32xf32> to vector<8xf32>
    %26 = vector.shape_cast %25 : vector<8xf32> to vector<8x1xf32>
    %cst_16 = arith.constant 3.200000e+01 : f32
    %27 = vector.broadcast %cst_16 : f32 to vector<8x1xf32>
    %28 = arith.divf %26, %27 : vector<8x1xf32>
    %29 = arith.mulf %14, %24 : vector<8x1xf32>
    %cst_17 = arith.constant 1.000000e-01 : f32
    %30 = vector.broadcast %cst_17 : f32 to vector<8x1xf32>
    %31 = arith.mulf %30, %28 : vector<8x1xf32>
    %32 = arith.subf %29, %31 : vector<8x1xf32>
    %33 = vector.shape_cast %32 : vector<8x1xf32> to vector<1x8x1xf32>
    %cst_18 = arith.constant dense<0.000000e+00> : vector<1xf32>
    %34 = vector.multi_reduction <add>, %33, %cst_18 [1, 2] : vector<1x8x1xf32> to vector<1xf32>
    %35 = vector.shape_cast %34 : vector<1xf32> to vector<1x1x1xf32>
    %36 = vector.extract %35[0, 0, 0] : f32 from vector<1x1x1xf32>
    %cst_19 = arith.constant 0.000000e+00 : f32
    %37 = arith.subf %cst_19, %36 : f32
    %38 = vector.broadcast %37 : f32 to vector<1x1xf32>
    %c0_20 = arith.constant 0 : index
    %c0_21 = arith.constant 0 : index
    %39 = vector.load %arg6[%c0_20, %c0_21] : memref<1x1xf32, #tpu.memory_space<vmem>>, vector<1x1xf32>
    tpu.vector_store %arg6[%c0_20, %c0_21], %38 {strides = array<i32>} : memref<1x1xf32, #tpu.memory_space<vmem>>, vector<1x1xf32>,
    return
  }
  func.func @transform_0(%arg0: i32) -> (i32, i32) {
    %c0_i32 = arith.constant 0 : i32
    %c0_i32_0 = arith.constant 0 : i32
    return %arg0, %c0_i32 : i32, i32
  }
  func.func @transform_1(%arg0: i32) -> (i32, i32) {
    %c0_i32 = arith.constant 0 : i32
    %c0_i32_0 = arith.constant 0 : i32
    return %arg0, %c0_i32 : i32, i32
  }
  func.func @transform_2(%arg0: i32) -> (i32, i32) {
    %c0_i32 = arith.constant 0 : i32
    %c0_i32_0 = arith.constant 0 : i32
    return %arg0, %c0_i32 : i32, i32
  }
  func.func @transform_3(%arg0: i32) -> (i32, i32) {
    %c0_i32 = arith.constant 0 : i32
    %c0_i32_0 = arith.constant 0 : i32
    return %arg0, %c0_i32 : i32, i32
  }
  func.func @transform_4(%arg0: i32) -> (i32, i32) {
    %c0_i32 = arith.constant 0 : i32
    %c0_i32_0 = arith.constant 0 : i32
    return %arg0, %c0_i32 : i32, i32
  }
  func.func @transform_5(%arg0: i32) -> (i32, i32) {
    %c0_i32 = arith.constant 0 : i32
    %c0_i32_0 = arith.constant 0 : i32
    return %arg0, %c0_i32 : i32, i32
  }
}

</mosaic_0001>

<bundles_post_ra>
// kernel: tpu_custom_call.1
= control target key start
LH: loop header
LB: loop body
LE: loop exit
PB: predicated region body
PF: predicated region fallthrough
CT: control target
= control target key end

     0   :  { %10 = vsyncpa [#allocation3], 0  ;;  %s366_s0 = inlined_call_operand.hbm [shape: f32[8,32], index: 0, kind: input, shape index: {}]   ;;  %s367_s1 = inlined_call_operand.hbm [shape: f32[8,32], index: 1, kind: input, shape index: {}]   ;;  %s368_s2 = inlined_call_operand.hbm [shape: f32[8,8], index: 2, kind: input, shape index: {}]   ;;  %s369_s3 = inlined_call_operand.vmem [shape: f32[8,8], index: 3, kind: input, shape index: {}]   ;;  %s370_s4 = inlined_call_operand.hbm [shape: f32[8,8], index: 4, kind: input, shape index: {}]   ;;  %s371_s5 = inlined_call_operand.hbm [shape: f32[1,1], index: 5, kind: output, shape index: {}]  }
   0x1   :  { %11 = vsyncpa [#allocation6], 0 }
   0x2   :  { %12 = vsyncpa [#allocation9], 0 }
   0x3   :  { %13 = vsyncpa [#allocation4], 0  ;;  %s266_s18 = smov [#allocation5]   ;;  %s267_s20 = smov [#allocation2]  }
   0x4   :  { %s30_s19 = sshll.u32 %s266_s18, 4  ;;  %s20_s21 = sshll.u32 %s267_s20, 4  ;;  %s31_s19 = int_to_ptr.vmem [resolvable:$true] %s30_s19  ;;  %s21_s21 = int_to_ptr.vmem [resolvable:$true] %s20_s21 }
   0x5   :  { %s148_s24 = scalar_lea.hbm %s367_s1, 128 }
   0x6   :  { %p149_p0 = scmp.ne.s32.totalorder %s367_s1, %s148_s24  ;;  %p152_p1 = scmp.lt.u32.totalorder %s148_s24, %s367_s1 }
   0x8   :  { %p154_p2 = pnand %p152_p1, %p149_p0 }
   0xa   :  { %157 = shalt.err (!%p154_p2)
}
   0xb   :  { %s158_s29 = scalar_lea.vmem %s31_s19, 128  ;;  %p163_p4 = scmp.lt.s32.totalorder %s31_s19, %s31_s19 }
   0xc   :  { %p159_p3 = scmp.ne.s32.totalorder %s31_s19, %s158_s29  ;;  %p164_p5 = scmp.lt.s32.totalorder %s158_s29, %s158_s29 }
   0xe   :  { %p165_p6 = por %p164_p5, %p163_p4 }
  0x10   :  { %p166_p7 = pnand %p165_p6, %p159_p3 }
  0x12   :  { %169 = shalt.err (!%p166_p7)
}
  0x13   :  { %33 = dma.hbm_to_vmem [thread:$0]  %s367_s1, 128, %s31_s19, [#allocation6]  }
  0x14   :  { %s170_s9 = scalar_lea.hbm %s366_s0, 128 }
  0x15   :  { %p171_p8 = scmp.ne.s32.totalorder %s366_s0, %s170_s9  ;;  %p174_p9 = scmp.lt.u32.totalorder %s170_s9, %s366_s0 }
  0x17   :  { %p176_p10 = pnand %p174_p9, %p171_p8 }
  0x19   :  { %179 = shalt.err (!%p176_p10)
}
  0x1a   :  { %s180_s14 = scalar_lea.vmem %s21_s21, 128  ;;  %p185_p12 = scmp.lt.s32.totalorder %s21_s21, %s21_s21 }
  0x1b   :  { %p181_p11 = scmp.ne.s32.totalorder %s21_s21, %s180_s14  ;;  %p186_p13 = scmp.lt.s32.totalorder %s180_s14, %s180_s14 }
  0x1d   :  { %p187_p0 = por %p186_p13, %p185_p12 }
  0x1f   :  { %p188_p1 = pnand %p187_p0, %p181_p11 }
  0x21   :  { %191 = shalt.err (!%p188_p1)
}
  0x22   :  { %23 = dma.hbm_to_vmem [thread:$0]  %s366_s0, 128, %s21_s21, [#allocation3]  }
  0x23   :  { %s268_s16 = smov [#allocation7]   ;;  %s269_s18 = smov [#allocation8]  }
  0x24   :  { %s40_s17 = sshll.u32 %s268_s16, 4  ;;  %s52_s19 = sshll.u32 %s269_s18, 4  ;;  %s41_s17 = int_to_ptr.vmem [resolvable:$true] %s40_s17  ;;  %s53_s19 = int_to_ptr.vmem [resolvable:$true] %s52_s19 }
  0x25   :  { %s192_s23 = scalar_lea.hbm %s368_s2, 128 }
  0x26   :  { %p193_p2 = scmp.ne.s32.totalorder %s368_s2, %s192_s23  ;;  %p196_p3 = scmp.lt.u32.totalorder %s192_s23, %s368_s2 }
  0x28   :  { %p198_p4 = pnand %p196_p3, %p193_p2 }
  0x2a   :  { %201 = shalt.err (!%p198_p4)
}
  0x2b   :  { %s202_s0 = scalar_lea.vmem %s41_s17, 128  ;;  %p207_p6 = scmp.lt.s32.totalorder %s41_s17, %s41_s17 }
  0x2c   :  { %p203_p5 = scmp.ne.s32.totalorder %s41_s17, %s202_s0  ;;  %p208_p7 = scmp.lt.s32.totalorder %s202_s0, %s202_s0 }
  0x2e   :  { %p209_p8 = por %p208_p7, %p207_p6 }
  0x30   :  { %p210_p9 = pnand %p209_p8, %p203_p5 }
  0x32   :  { %213 = shalt.err (!%p210_p9)
}
  0x33   :  { %43 = dma.hbm_to_vmem [thread:$0]  %s368_s2, 128, %s41_s17, [#allocation6]  }
  0x34   :  { %s214_s6 = scalar_lea.hbm %s370_s4, 128 }
  0x35   :  { %p215_p10 = scmp.ne.s32.totalorder %s370_s4, %s214_s6  ;;  %p218_p11 = scmp.lt.u32.totalorder %s214_s6, %s370_s4 }
  0x37   :  { %p220_p12 = pnand %p218_p11, %p215_p10 }
  0x39   :  { %223 = shalt.err (!%p220_p12)
}
  0x3a   :  { %s224_s11 = scalar_lea.vmem %s53_s19, 128  ;;  %p229_p0 = scmp.lt.s32.totalorder %s53_s19, %s53_s19 }
  0x3b   :  { %p225_p13 = scmp.ne.s32.totalorder %s53_s19, %s224_s11  ;;  %p230_p1 = scmp.lt.s32.totalorder %s224_s11, %s224_s11 }
  0x3d   :  { %p231_p2 = por %p230_p1, %p229_p0 }
  0x3f   :  { %p232_p3 = pnand %p231_p2, %p225_p13 }
  0x41   :  { %235 = shalt.err (!%p232_p3)
}
  0x42   :  { %55 = dma.hbm_to_vmem [thread:$0]  %s370_s4, 128, %s53_s19, [#allocation9]  }
  0x43   :  { %258 = dma.done.wait [#allocation3], 128  }
  0x44   :  { %259 = vsyncadd [#allocation3], 4294967168 }
  0x45   :  { %260 = dma.done.wait [#allocation6], 256  }
  0x46   :  { %261 = vsyncadd [#allocation6], 4294967040 }
  0x47   :  { %262 = dma.done.wait [#allocation9], 128  }
  0x48   :  { %263 = vsyncadd [#allocation9], 4294967168  ;;  %vm91_vm0 = vcmask 261120   ;;  %v68_v0 = vld [vmem:[#allocation2] sm:$0xff]  ;;  %v69_v1 = vld [vmem:[#allocation5] sm:$0xff]  ;;  %vm81_vm2 = vcmask 64512  }
  0x49   :  { %v70_v2 = vld [vmem:[#allocation7] sm:$0xff]  ;;  %vm85_vm1 = vcmp.ge.f32.partialorder %v69_v1, 0.5  ;;  %v95_v3 = vsel %vm91_vm0, %v68_v0, 0.0  ;;  %v86_v4 = vsub.f32 1.0, %v68_v0  ;;  %v71_v5 = vld [vmem:[%s369_s3] sm:$0xff]  ;;  %v72_v15 = vld [vmem:[#allocation8] sm:$0xff] }
  0x4a   :  { %96 = vadd.xlane.f32.xlu0 %v95_v3  ;;  %v73_v6 = vadd.f32 1e-08, %v70_v2  ;;  %v76_v7 = vadd.f32 1e-08, %v71_v5  ;;  %vm103_vm3 = vcmask 7168   ;;  %s270_s3 = smov [#allocation10]  }
  0x4b   :  { %v87_v8 = vsel %vm85_vm1, %v68_v0, %v86_v4  ;;  %s124_s4 = sshll.u32 %s270_s3, 4  ;;  %vm116_vm4 = vcmask 0   ;;  %s125_s4 = int_to_ptr.vmem [resolvable:$true] %s124_s4 }
  0x4c   :  { %v88_v9 = vadd.f32 1e-08, %v87_v8  ;;  %142 = vlog2.f32 %v73_v6  ;;  %s236_s16 = scalar_lea.vmem %s125_s4, 16  ;;  %s240_s17 = scalar_lea.vmem %s125_s4, 32 }
  0x4d   :  { %144 = vlog2.f32 %v76_v7  ;;  %p237_p4 = scmp.ne.s32.totalorder %s125_s4, %s236_s16  ;;  %p241_p5 = scmp.lt.s32.totalorder %s125_s4, %s125_s4 }
  0x4e   :  { %146 = vlog2.f32 %v88_v9  ;;  %p242_p6 = scmp.lt.s32.totalorder %s240_s17, %s236_s16 }
  0x50   :  { %p243_p7 = por %p242_p6, %p241_p5 }
  0x52   :  { %p244_p8 = pnand %p243_p7, %p237_p4 }
  0x56   :  { %v143_v10 = vpop.eup %142 }
  0x57   :  { %v145_v11 = vpop.eup %144  ;;  %v75_v12 = vmul.f32 0.6931472, %v143_v10 }
  0x58   :  { %v147_v13 = vpop.eup %146  ;;  %v78_v14 = vmul.f32 0.6931472, %v145_v11 }
  0x59   :  { %v90_v16 = vmul.f32 0.6931472, %v147_v13 }
  0x5a   :  { %v79_v17 = vsub.f32 %v75_v12, %v78_v14 }
  0x5b   :  { %v92_v18 = vsel %vm91_vm0, %v90_v16, 0.0 }
  0x5c   :  { %v80_v19 = vmul.f32 %v79_v17, %v72_v15  ;;  %93 = vadd.xlane.f32.xlu1 %v92_v18 }
  0x5e   :  { %v82_v20 = vsel %vm81_vm2, %v80_v19, 0.0 }
  0x5f   :  { %83 = vadd.xlane.f32.xlu0 %v82_v20 }
  0xd7   :  { %v97_v21 = vpop.xlane.xlu0 %96 }
  0xd8   :  { %v99_v22 = vmul.f32 0.03125, %v97_v21 }
  0xda   :  { %v101_v25 = vmul.f32 0.1, %v99_v22 }
  0xe9   :  { %v94_v23 = vpop.xlane.xlu1 %93 }
  0xec   :  { %v84_v24 = vpop.xlane.xlu0 %83 }
  0xed   :  { %v100_v26 = vmul.f32 %v94_v23, %v84_v24 }
  0xef   :  { %v102_v27 = vsub.f32 %v100_v26, %v101_v25 }
  0xf1   :  { %v104_v28 = vsel %vm103_vm3, %v102_v27, 0.0 }
  0xf2   :  { %105 = vadd.xlane.f32.xlu1 %v104_v28 }
 0x17f   :  { %v106_v29 = vpop.xlane.xlu1 %105 }
 0x180   :  { %v107_v30 = vrot.slane %v106_v29, 4 }
 0x182   :  { %v108_v31 = vadd.f32 %v107_v30, %v106_v29 }
 0x184   :  { %v109_v32 = vrot.slane %v108_v31, 2 }
 0x186   :  { %v110_v33 = vadd.f32 %v109_v32, %v108_v31 }
 0x188   :  { %v111_v34 = vrot.slane %v110_v33, 1 }
 0x18a   :  { %v112_v35 = vadd.f32 %v111_v34, %v110_v33 }
 0x18c   :  { %135 = vpush %v112_v35 }
 0x1bd   :  { %s136_s1 = spop %135 }
 0x1be   :  { %s114_s15 = ssub.f32 0.0, %s136_s1 }
 0x1c0   :  { %v115_v36 = vstv %s114_s15 }
 0x1c1   :  { %117 = vst.msk [vmem:[#allocation10] sm:$0x1] %vm116_vm4, %v115_v36 }
 0x1c2   :  { %247 = shalt.err (!%p244_p8)
}
 0x1c3   :  { %s248_s20 = scalar_lea.hbm %s371_s5, 16 }
 0x1c4   :  { %p249_p9 = scmp.ne.s32.totalorder %s371_s5, %s248_s20  ;;  %p252_p10 = scmp.lt.u32.totalorder %s248_s20, %s371_s5 }
 0x1c6   :  { %p254_p11 = pnand %p252_p10, %p249_p9 }
 0x1c8   :  { %257 = shalt.err (!%p254_p11)
}
 0x1c9   :  { %127 = dma.vmem_to_hbm [thread:$0]  %s125_s4, 16, %s371_s5, [#allocation4]  }
 0x1ca   :  { %264 = dma.done.wait [#allocation4], 16  }
 0x1cb   :  { %265 = vsyncadd [#allocation4], 4294967280 }
 0x1cc   :  { %131 = vsyncpa [#allocation3], 1 }
 0x1cd   :  { %132 = vsyncpa [#allocation6], 1 }
 0x1ce   :  { %133 = vsyncpa [#allocation9], 1 }
 0x1cf   :  { %134 = vsyncpa [#allocation4], 1 }

</bundles_post_ra>
